<compile_context>
chip_gen: v5e
topology: v5e:2x2
jax: 0.10.0
libtpu: 0.0.40
codegen_flags: <defaults>
</compile_context>

<pallas_src>
import jax
import jax.numpy as jnp
from jax.experimental import pallas as pl
from jax.experimental.pallas import tpu as pltpu

IN_DIM = 28 * 28   # 784 (full array dim, so no lane padding needed for the x block)
H1 = 128
H2 = 64
OUT_DIM = 10

H2P = 128          # H2 padded to a full 128-lane width
OUTP = 128         # OUT_DIM padded to a full 128-lane width (lane-dense stores)

_GRANULE = 16      # sublane granularity that is legal for both f32 (8) and bf16 (16)


def _round_up(n, m):
    return ((n + m - 1) // m) * m


def _choose_tile_b(B, tile_b):
    """Largest tile <= tile_b, preferring >=4 (else >=2) grid steps when that keeps
    tiles >= 512 rows (pipelining + v7x megacore), never shrinking below that just
    to manufacture extra steps (per-step overhead would dominate again)."""
    full = _round_up(B, _GRANULE)
    for n_blocks in (4, 2):
        cand = _round_up(pl.cdiv(B, n_blocks), _GRANULE)
        if 512 <= cand <= tile_b:
            return cand
    return min(tile_b, full)


def _mlp_kernel(x_ref, w1_ref, b1_ref, w2_ref, b2_ref, w3_ref, b3_ref, o_ref):
    # Entire forward pass runs fused on the MXU/VPU for one batch tile.
    # Matmul inputs are in the streaming dtype (bf16 or f32); accumulation, bias
    # add and ReLU are in f32.
    x = x_ref[...]                                                        # (TB, 784)
    h1 = jnp.dot(x, w1_ref[...], preferred_element_type=jnp.float32)      # (TB, 128) f32
    h1 = jnp.maximum(h1 + b1_ref[...], 0.0)                               # ReLU (f32)
    h1 = h1.astype(w2_ref.dtype)
    h2 = jnp.dot(h1, w2_ref[...], preferred_element_type=jnp.float32)     # (TB, 128) padded
    h2 = jnp.maximum(h2 + b2_ref[...], 0.0)                               # pad cols stay 0
    h2 = h2.astype(w3_ref.dtype)
    out = jnp.dot(h2, w3_ref[...], preferred_element_type=jnp.float32)    # (TB, 128) padded
    o_ref[...] = (out + b3_ref[...]).astype(o_ref.dtype)                  # lane-dense store


def feedforward_nn(x, params, *, tile_b=2048, compute_dtype=jnp.bfloat16):
    """x: (B, 1, 28, 28) or (B, 784) float32. Returns (B, 10) float32 logits.

    compute_dtype=jnp.bfloat16 streams x/weights in bf16 (f32 accumulation);
    use jnp.float32 for bit-comparable nn.Linear numerics.
    """
    w1, b1, w2, b2, w3, b3 = params
    cdt = jnp.dtype(compute_dtype)

    x2d = x.reshape(-1, IN_DIM).astype(cdt)          # same as torch x.view(-1, 784)
    B = x2d.shape[0]

    tb = _choose_tile_b(B, tile_b)
    grid_b = pl.cdiv(B, tb)    # ragged tail handled by Pallas partial blocks (no jnp.pad)

    # Zero-pad the narrow layers to full 128-lane width (one-time tiny pads).
    # Weights stream in compute dtype; biases stay f32 (added to f32 accumulators).
    w1c = w1.astype(cdt)
    w2p = jnp.pad(w2, ((0, 0), (0, H2P - H2))).astype(cdt)
    b2p = jnp.pad(b2, ((0, 0), (0, H2P - H2)))
    w3p = jnp.pad(w3, ((0, H2P - H2), (0, OUTP - OUT_DIM))).astype(cdt)
    b3p = jnp.pad(b3, ((0, 0), (0, OUTP - OUT_DIM)))

    # VMEM: double-buffered x tile + out tile + (effectively resident) weights/biases,
    # with 1.5x slack; clamped well below the 64 MiB physical VMEM of a v7x core.
    w_bytes = (IN_DIM * H1 + H1 * H2P + H2P * OUTP) * cdt.itemsize \
              + (H1 + H2P + OUTP) * 4
    need = 2 * tb * IN_DIM * cdt.itemsize + 2 * tb * OUTP * 4 + 2 * w_bytes
    vmem_limit = min(48 << 20, max(32 << 20, int(need * 1.5) + (4 << 20)))

    flops = 2 * B * (IN_DIM * H1 + H1 * H2P + H2P * OUTP)
    bytes_accessed = (B * IN_DIM * cdt.itemsize          # x streamed
                      + B * OUTP * 4                     # padded f32 logits
                      + w_bytes)                         # weights read once

    out = pl.pallas_call(
        _mlp_kernel,
        out_shape=jax.ShapeDtypeStruct((B, OUTP), jnp.float32),
        grid_spec=pltpu.PrefetchScalarGridSpec(
            num_scalar_prefetch=0,
            grid=(grid_b,),
            in_specs=[
                pl.BlockSpec((tb, IN_DIM), lambda i: (i, 0)),   # x tile (streamed)
                pl.BlockSpec((IN_DIM, H1), lambda i: (0, 0)),   # w1 (resident)
                pl.BlockSpec((1, H1), lambda i: (0, 0)),        # b1 (f32)
                pl.BlockSpec((H1, H2P), lambda i: (0, 0)),      # w2 (padded, resident)
                pl.BlockSpec((1, H2P), lambda i: (0, 0)),       # b2 (f32)
                pl.BlockSpec((H2P, OUTP), lambda i: (0, 0)),    # w3 (padded, resident)
                pl.BlockSpec((1, OUTP), lambda i: (0, 0)),      # b3 (f32)
            ],
            out_specs=pl.BlockSpec((tb, OUTP), lambda i: (i, 0)),
        ),
        compiler_params=pltpu.CompilerParams(
            # parallel batch axis -> shards across both TCs on v7x; harmless elsewhere
            dimension_semantics=("parallel",),
            vmem_limit_bytes=vmem_limit,
        ),
        cost_estimate=pl.CostEstimate(
            flops=flops, transcendentals=0, bytes_accessed=bytes_accessed),
    )(x2d, w1c, b1, w2p, b2p, w3p, b3p)

    # Strip the lane padding of the logits (no batch padding was introduced).
    # If a (B, 128) padded slab is acceptable downstream, return `out` directly
    # and slice lanes once at the consumer to save this copy.
    return out[:, :OUT_DIM]


def init_params(key):
    """Deterministic parameter init matching nn.Linear shapes (stored transposed)."""
    ks = jax.random.split(key, 6)

    def linear_init(kw, kb, fan_in, fan_out):
        bound = 1.0 / jnp.sqrt(fan_in)
        w = jax.random.uniform(kw, (fan_in, fan_out), jnp.float32, -bound, bound)
        b = jax.random.uniform(kb, (1, fan_out), jnp.float32, -bound, bound)
        return w, b

    w1, b1 = linear_init(ks[0], ks[1], IN_DIM, H1)
    w2, b2 = linear_init(ks[2], ks[3], H1, H2)
    w3, b3 = linear_init(ks[4], ks[5], H2, OUT_DIM)
    return (w1, b1, w2, b2, w3, b3)


def reference_forward(x, params):
    w1, b1, w2, b2, w3, b3 = params
    x = x.reshape(-1, IN_DIM)
    h1 = jnp.maximum(x @ w1 + b1, 0.0)
    h2 = jnp.maximum(h1 @ w2 + b2, 0.0)
    return h2 @ w3 + b3


if __name__ == "__main__":
    key = jax.random.PRNGKey(0)
    k_x1, k_x2, k_p = jax.random.split(key, 3)
    params = init_params(k_p)

    # 1) Small single-tile test, exact f32 path vs reference.
    B1 = 16
    x1 = jax.random.normal(k_x1, (B1, 1, 28, 28), jnp.float32)
    out1 = jax.block_until_ready(feedforward_nn(x1, params, compute_dtype=jnp.float32))
    ref1 = reference_forward(x1, params)
    assert out1.shape == (B1, OUT_DIM)
    assert jnp.allclose(out1, ref1, atol=1e-4, rtol=1e-4), "f32 path mismatch vs reference"

    # 2) Multi-tile, ragged-batch test on the default bf16 streaming path
    #    (exercises partial last block, multi-step pipeline, megacore sharding).
    B2 = 1000
    x2 = jax.random.normal(k_x2, (B2, 1, 28, 28), jnp.float32)
    out2 = jax.block_until_ready(feedforward_nn(x2, params))
    ref2 = reference_forward(x2, params)
    assert out2.shape == (B2, OUT_DIM)
    assert jnp.allclose(out2, ref2, atol=5e-2, rtol=5e-2), "bf16 path drifted beyond budget"

    print("KERNEL_OK")
</pallas_src>

<mosaic_0001>
module attributes {stable_mosaic.version = 11 : i64} {
  func.func @_mlp_kernel(%arg0: i32, %arg1: memref<16x784xf32, #tpu.memory_space<vmem>>, %arg2: memref<784x128xf32, #tpu.memory_space<vmem>>, %arg3: memref<1x128xf32, #tpu.memory_space<vmem>>, %arg4: memref<128x128xf32, #tpu.memory_space<vmem>>, %arg5: memref<1x128xf32, #tpu.memory_space<vmem>>, %arg6: memref<128x128xf32, #tpu.memory_space<vmem>>, %arg7: memref<1x128xf32, #tpu.memory_space<vmem>>, %arg8: memref<16x128xf32, #tpu.memory_space<vmem>>) attributes {dimension_semantics = [#tpu.dimension_semantics<parallel>], iteration_bounds = array<i64: 1>, scalar_prefetch = 0 : i64, scratch_operands = 0 : i64, tpu.core_type = #tpu.core_type<tc>, window_params = [{transform_indices = @transform_0, window_bounds = array<i64: 16, 784>}, {pipeline_mode = #tpu.pipeline_mode<synchronous>, transform_indices = @transform_1, window_bounds = array<i64: 784, 128>}, {pipeline_mode = #tpu.pipeline_mode<synchronous>, transform_indices = @transform_2, window_bounds = array<i64: 1, 128>}, {pipeline_mode = #tpu.pipeline_mode<synchronous>, transform_indices = @transform_3, window_bounds = array<i64: 128, 128>}, {pipeline_mode = #tpu.pipeline_mode<synchronous>, transform_indices = @transform_4, window_bounds = array<i64: 1, 128>}, {pipeline_mode = #tpu.pipeline_mode<synchronous>, transform_indices = @transform_5, window_bounds = array<i64: 128, 128>}, {pipeline_mode = #tpu.pipeline_mode<synchronous>, transform_indices = @transform_6, window_bounds = array<i64: 1, 128>}, {transform_indices = @transform_7, window_bounds = array<i64: 16, 128>}]} {
    %c0 = arith.constant 0 : index
    %c0_0 = arith.constant 0 : index
    %0 = vector.load %arg1[%c0, %c0_0] : memref<16x784xf32, #tpu.memory_space<vmem>>, vector<16x784xf32>
    %c0_1 = arith.constant 0 : index
    %c0_2 = arith.constant 0 : index
    %1 = vector.load %arg2[%c0_1, %c0_2] : memref<784x128xf32, #tpu.memory_space<vmem>>, vector<784x128xf32>
    %cst = arith.constant dense<0.000000e+00> : vector<16x128xf32>
    %2 = tpu.matmul %0, %1, %cst {dimension_numbers = #tpu.dot_dimension_numbers<[1], [0], [0], [1], [0, 0, 1, 1], [], []>} : vector<16x784xf32>, vector<784x128xf32>, vector<16x128xf32> -> vector<16x128xf32>
    %c0_3 = arith.constant 0 : index
    %c0_4 = arith.constant 0 : index
    %3 = vector.load %arg3[%c0_3, %c0_4] : memref<1x128xf32, #tpu.memory_space<vmem>>, vector<1x128xf32>
    %4 = vector.broadcast %3 : vector<1x128xf32> to vector<16x128xf32>
    %5 = arith.addf %2, %4 : vector<16x128xf32>
    %cst_5 = arith.constant 0.000000e+00 : f32
    %6 = vector.broadcast %cst_5 : f32 to vector<16x128xf32>
    %7 = arith.maximumf %5, %6 : vector<16x128xf32>
    %c0_6 = arith.constant 0 : index
    %c0_7 = arith.constant 0 : index
    %8 = vector.load %arg4[%c0_6, %c0_7] : memref<128x128xf32, #tpu.memory_space<vmem>>, vector<128x128xf32>
    %cst_8 = arith.constant dense<0.000000e+00> : vector<16x128xf32>
    %9 = tpu.matmul %7, %8, %cst_8 {dimension_numbers = #tpu.dot_dimension_numbers<[1], [0], [0], [1], [0, 0, 1, 1], [], []>} : vector<16x128xf32>, vector<128x128xf32>, vector<16x128xf32> -> vector<16x128xf32>
    %c0_9 = arith.constant 0 : index
    %c0_10 = arith.constant 0 : index
    %10 = vector.load %arg5[%c0_9, %c0_10] : memref<1x128xf32, #tpu.memory_space<vmem>>, vector<1x128xf32>
    %11 = vector.broadcast %10 : vector<1x128xf32> to vector<16x128xf32>
    %12 = arith.addf %9, %11 : vector<16x128xf32>
    %cst_11 = arith.constant 0.000000e+00 : f32
    %13 = vector.broadcast %cst_11 : f32 to vector<16x128xf32>
    %14 = arith.maximumf %12, %13 : vector<16x128xf32>
    %c0_12 = arith.constant 0 : index
    %c0_13 = arith.constant 0 : index
    %15 = vector.load %arg6[%c0_12, %c0_13] : memref<128x128xf32, #tpu.memory_space<vmem>>, vector<128x128xf32>
    %cst_14 = arith.constant dense<0.000000e+00> : vector<16x128xf32>
    %16 = tpu.matmul %14, %15, %cst_14 {dimension_numbers = #tpu.dot_dimension_numbers<[1], [0], [0], [1], [0, 0, 1, 1], [], []>} : vector<16x128xf32>, vector<128x128xf32>, vector<16x128xf32> -> vector<16x128xf32>
    %c0_15 = arith.constant 0 : index
    %c0_16 = arith.constant 0 : index
    %17 = vector.load %arg7[%c0_15, %c0_16] : memref<1x128xf32, #tpu.memory_space<vmem>>, vector<1x128xf32>
    %18 = vector.broadcast %17 : vector<1x128xf32> to vector<16x128xf32>
    %19 = arith.addf %16, %18 : vector<16x128xf32>
    %c0_17 = arith.constant 0 : index
    %c0_18 = arith.constant 0 : index
    %20 = vector.load %arg8[%c0_17, %c0_18] : memref<16x128xf32, #tpu.memory_space<vmem>>, vector<16x128xf32>
    tpu.vector_store %arg8[%c0_17, %c0_18], %19 {strides = array<i32>} : memref<16x128xf32, #tpu.memory_space<vmem>>, vector<16x128xf32>,
    return
  }
  func.func @transform_0(%arg0: i32) -> (i32, i32) {
    %c0_i32 = arith.constant 0 : i32
    %c0_i32_0 = arith.constant 0 : i32
    return %arg0, %c0_i32 : i32, i32
  }
  func.func @transform_1(%arg0: i32) -> (i32, i32) {
    %c0_i32 = arith.constant 0 : i32
    %c0_i32_0 = arith.constant 0 : i32
    %c0_i32_1 = arith.constant 0 : i32
    return %c0_i32, %c0_i32_0 : i32, i32
  }
  func.func @transform_2(%arg0: i32) -> (i32, i32) {
    %c0_i32 = arith.constant 0 : i32
    %c0_i32_0 = arith.constant 0 : i32
    %c0_i32_1 = arith.constant 0 : i32
    return %c0_i32, %c0_i32_0 : i32, i32
  }
  func.func @transform_3(%arg0: i32) -> (i32, i32) {
    %c0_i32 = arith.constant 0 : i32
    %c0_i32_0 = arith.constant 0 : i32
    %c0_i32_1 = arith.constant 0 : i32
    return %c0_i32, %c0_i32_0 : i32, i32
  }
  func.func @transform_4(%arg0: i32) -> (i32, i32) {
    %c0_i32 = arith.constant 0 : i32
    %c0_i32_0 = arith.constant 0 : i32
    %c0_i32_1 = arith.constant 0 : i32
    return %c0_i32, %c0_i32_0 : i32, i32
  }
  func.func @transform_5(%arg0: i32) -> (i32, i32) {
    %c0_i32 = arith.constant 0 : i32
    %c0_i32_0 = arith.constant 0 : i32
    %c0_i32_1 = arith.constant 0 : i32
    return %c0_i32, %c0_i32_0 : i32, i32
  }
  func.func @transform_6(%arg0: i32) -> (i32, i32) {
    %c0_i32 = arith.constant 0 : i32
    %c0_i32_0 = arith.constant 0 : i32
    %c0_i32_1 = arith.constant 0 : i32
    return %c0_i32, %c0_i32_0 : i32, i32
  }
  func.func @transform_7(%arg0: i32) -> (i32, i32) {
    %c0_i32 = arith.constant 0 : i32
    %c0_i32_0 = arith.constant 0 : i32
    return %arg0, %c0_i32 : i32, i32
  }
}

</mosaic_0001>

<bundles_post_ra>
// kernel: tpu_custom_call.1
= control target key start
LH: loop header
LB: loop body
LE: loop exit
PB: predicated region body
PF: predicated region fallthrough
CT: control target
= control target key end

     0   :  { %12 = vsyncpa [#allocation3], 0  ;;  %s716_s0 = inlined_call_operand.hbm [shape: f32[16,784], index: 0, kind: input, shape index: {}]   ;;  %s717_s1 = inlined_call_operand.hbm [shape: f32[784,128], index: 1, kind: input, shape index: {}]   ;;  %s718_s2 = inlined_call_operand.vmem [shape: f32[1,128], index: 2, kind: input, shape index: {}]   ;;  %s719_s3 = inlined_call_operand.hbm [shape: f32[128,128], index: 3, kind: input, shape index: {}]   ;;  %s720_s4 = inlined_call_operand.vmem [shape: f32[1,128], index: 4, kind: input, shape index: {}]   ;;  %s721_s5 = inlined_call_operand.hbm [shape: f32[128,128], index: 5, kind: input, shape index: {}]   ;;  %s722_s6 = inlined_call_operand.vmem [shape: f32[1,128], index: 6, kind: input, shape index: {}]   ;;  %s723_s7 = inlined_call_operand.hbm [shape: f32[16,128], index: 7, kind: output, shape index: {}]  }
   0x1   :  { %13 = vsyncpa [#allocation6], 0 }
   0x2   :  { %14 = vsyncpa [#allocation9], 0  ;;  %s33_s26 = sshll.u32 %s717_s1, 4  ;;  %s34_s26 = int_to_ptr.hbm [resolvable:$true] %s33_s26 }
   0x3   :  { %15 = vsyncpa [#allocation4], 0  ;;  %s629_s27 = smov [#allocation5]   ;;  %s20_s8 = sshll.u32 %s716_s0, 4  ;;  %s21_s8 = int_to_ptr.hbm [resolvable:$true] %s20_s8 }
   0x4   :  { %s35_s28 = sshll.u32 %s629_s27, 4  ;;  %s630_s9 = smov 128   ;;  %s36_s28 = int_to_ptr.vmem [resolvable:$true] %s35_s28 }
   0x5   :  { %s631_s10 = smov 8   ;;  %s632_s11 = smov [#allocation2]  }
   0x6   :  { %41 = dma.hbm_to_vmem [thread:$0]  %s34_s26, 12544, %s36_s28, [#allocation6], %s630_s9, %s630_s9, %s631_s10  }
   0x7   :  { %s22_s12 = sshll.u32 %s632_s11, 4  ;;  %s633_s1 = smov 896   ;;  %s23_s12 = int_to_ptr.vmem [resolvable:$true] %s22_s12 }
   0x8   :  { %s634_s13 = smov 56   ;;  %s48_s16 = sshll.u32 %s719_s3, 4  ;;  %s49_s16 = int_to_ptr.hbm [resolvable:$true] %s48_s16 }
   0x9   :  { %28 = dma.hbm_to_vmem [thread:$0]  %s21_s8, 1792, %s23_s12, [#allocation3], %s633_s1, %s633_s1, %s634_s13  }
   0xa   :  { %s635_s17 = smov [#allocation7]   ;;  %s63_s20 = sshll.u32 %s721_s5, 4  ;;  %s64_s20 = int_to_ptr.hbm [resolvable:$true] %s63_s20 }
   0xb   :  { %s50_s0 = sshll.u32 %s635_s17, 4  ;;  %s636_s21 = smov [#allocation8]   ;;  %s51_s0 = int_to_ptr.vmem [resolvable:$true] %s50_s0 }
   0xc   :  { %56 = dma.hbm_to_vmem [thread:$0]  %s49_s16, 2048, %s51_s0, [#allocation6], %s630_s9, %s630_s9, %s631_s10  }
   0xd   :  { %s65_s22 = sshll.u32 %s636_s21, 4  ;;  %s66_s22 = int_to_ptr.vmem [resolvable:$true] %s65_s22 }
   0xe   :  { %71 = dma.hbm_to_vmem [thread:$0]  %s64_s20, 2048, %s66_s22, [#allocation9], %s630_s9, %s630_s9, %s631_s10  }
   0xf   :  { %621 = dma.done.wait [#allocation3], 1792  }
  0x10   :  { %622 = vsyncadd [#allocation3], 4294965504 }
  0x11   :  { %623 = dma.done.wait [#allocation6], 14592  }
  0x12   :  { %624 = vsyncadd [#allocation6], 4294952704 }
  0x13   :  { %625 = dma.done.wait [#allocation9], 2048  }
  0x14   :  { %626 = vsyncadd [#allocation9], 4294965248  ;;  %v119_v0 = vld [vmem:[#allocation5 + $0x78] sm:$0xff]  ;;  %v118_v1 = vld [vmem:[#allocation5 + $0x70] sm:$0xff]  ;;  %vm206_vm0 = vcmask 130048   ;;  %s637_s26 = smov [#allocation10]  }
  0x15   :  { %v135_v2 = vld [vmem:[#allocation5 + $0xf8] sm:$0xff]  ;;  %213 = vmatpush.msra.mxu0 %v119_v0  ;;  %v134_v3 = vld [vmem:[#allocation5 + $0xf0] sm:$0xff]  ;;  %v117_v4 = vld [vmem:[#allocation5 + $0x68] sm:$0xff]  ;;  %s470_s27 = sshll.u32 %s637_s26, 4  ;;  %s471_s27 = int_to_ptr.vmem [resolvable:$true] %s470_s27 }
  0x16   :  { %236 = vmatpush.msra.mxu1 %v135_v2  ;;  %v133_v5 = vld [vmem:[#allocation5 + $0xe8] sm:$0xff]  ;;  %v116_v6 = vld [vmem:[#allocation5 + $0x60] sm:$0xff]  ;;  %v151_v8 = vld [vmem:[#allocation5 + $0x178] sm:$0xff] }
  0x17   :  { %214 = vmatpush.msra.mxu0 %v118_v1  ;;  %v132_v7 = vld [vmem:[#allocation5 + $0xe0] sm:$0xff]  ;;  %v150_v9 = vld [vmem:[#allocation5 + $0x170] sm:$0xff]  ;;  %v167_v10 = vld [vmem:[#allocation5 + $0x1f8] sm:$0xff]  ;;  %259 = vmatpush.msra.mxu2 %v151_v8 }
  0x18   :  { %237 = vmatpush.msra.mxu1 %v134_v3  ;;  %v115_v11 = vld [vmem:[#allocation5 + $0x58] sm:$0xff]  ;;  %282 = vmatpush.msra.mxu3 %v167_v10  ;;  %v149_v13 = vld [vmem:[#allocation5 + $0x168] sm:$0xff]  ;;  %v166_v14 = vld [vmem:[#allocation5 + $0x1f0] sm:$0xff] }
  0x19   :  { %215 = vmatpush.msra.mxu0 %v117_v4  ;;  %v131_v12 = vld [vmem:[#allocation5 + $0xd8] sm:$0xff]  ;;  %v114_v15 = vld [vmem:[#allocation5 + $0x50] sm:$0xff]  ;;  %260 = vmatpush.msra.mxu2 %v150_v9  ;;  %v165_v17 = vld [vmem:[#allocation5 + $0x1e8] sm:$0xff] }
  0x1a   :  { %238 = vmatpush.msra.mxu1 %v133_v5  ;;  %v130_v16 = vld [vmem:[#allocation5 + $0xd0] sm:$0xff]  ;;  %283 = vmatpush.msra.mxu3 %v166_v14  ;;  %v148_v18 = vld [vmem:[#allocation5 + $0x160] sm:$0xff]  ;;  %v113_v20 = vld [vmem:[#allocation5 + $0x48] sm:$0xff] }
  0x1b   :  { %216 = vmatpush.msra.mxu0 %v116_v6  ;;  %v164_v19 = vld [vmem:[#allocation5 + $0x1e0] sm:$0xff]  ;;  %v129_v21 = vld [vmem:[#allocation5 + $0xc8] sm:$0xff]  ;;  %261 = vmatpush.msra.mxu2 %v149_v13  ;;  %v147_v22 = vld [vmem:[#allocation5 + $0x158] sm:$0xff] }
  0x1c   :  { %239 = vmatpush.msra.mxu1 %v132_v7  ;;  %284 = vmatpush.msra.mxu3 %v165_v17  ;;  %v163_v23 = vld [vmem:[#allocation5 + $0x1d8] sm:$0xff]  ;;  %v112_v24 = vld [vmem:[#allocation5 + $0x40] sm:$0xff]  ;;  %v146_v26 = vld [vmem:[#allocation5 + $0x150] sm:$0xff] }
  0x1d   :  { %217 = vmatpush.msra.mxu0 %v115_v11  ;;  %v128_v25 = vld [vmem:[#allocation5 + $0xc0] sm:$0xff]  ;;  %262 = vmatpush.msra.mxu2 %v148_v18  ;;  %v162_v27 = vld [vmem:[#allocation5 + $0x1d0] sm:$0xff]  ;;  %v111_v28 = vld [vmem:[#allocation5 + $0x38] sm:$0xff] }
  0x1e   :  { %240 = vmatpush.msra.mxu1 %v131_v12  ;;  %285 = vmatpush.msra.mxu3 %v164_v19  ;;  %v127_v29 = vld [vmem:[#allocation5 + $0xb8] sm:$0xff]  ;;  %v145_v30 = vld [vmem:[#allocation5 + $0x148] sm:$0xff]  ;;  %v110_v32 = vld [vmem:[#allocation5 + $0x30] sm:$0xff] }
  0x1f   :  { %218 = vmatpush.msra.mxu0 %v114_v15  ;;  %263 = vmatpush.msra.mxu2 %v147_v22  ;;  %v161_v31 = vld [vmem:[#allocation5 + $0x1c8] sm:$0xff]  ;;  %v126_v33 = vld [vmem:[#allocation5 + $0xb0] sm:$0xff]  ;;  %v144_v34 = vld [vmem:[#allocation5 + $0x140] sm:$0xff] }
  0x20   :  { %241 = vmatpush.msra.mxu1 %v130_v16  ;;  %286 = vmatpush.msra.mxu3 %v163_v23  ;;  %v160_v35 = vld [vmem:[#allocation5 + $0x1c0] sm:$0xff]  ;;  %v109_v36 = vld [vmem:[#allocation5 + $0x28] sm:$0xff]  ;;  %v143_v38 = vld [vmem:[#allocation5 + $0x138] sm:$0xff] }
  0x21   :  { %219 = vmatpush.msra.mxu0 %v113_v20  ;;  %264 = vmatpush.msra.mxu2 %v146_v26  ;;  %v125_v37 = vld [vmem:[#allocation5 + $0xa8] sm:$0xff]  ;;  %v159_v39 = vld [vmem:[#allocation5 + $0x1b8] sm:$0xff]  ;;  %v108_v40 = vld [vmem:[#allocation5 + $0x20] sm:$0xff] }
  0x22   :  { %242 = vmatpush.msra.mxu1 %v129_v21  ;;  %287 = vmatpush.msra.mxu3 %v162_v27  ;;  %v124_v41 = vld [vmem:[#allocation5 + $0xa0] sm:$0xff]  ;;  %v142_v42 = vld [vmem:[#allocation5 + $0x130] sm:$0xff]  ;;  %v107_v44 = vld [vmem:[#allocation5 + $0x18] sm:$0xff] }
  0x23   :  { %220 = vmatpush.msra.mxu0 %v112_v24  ;;  %265 = vmatpush.msra.mxu2 %v145_v30  ;;  %v158_v43 = vld [vmem:[#allocation5 + $0x1b0] sm:$0xff]  ;;  %v123_v45 = vld [vmem:[#allocation5 + $0x98] sm:$0xff]  ;;  %v141_v46 = vld [vmem:[#allocation5 + $0x128] sm:$0xff] }
  0x24   :  { %243 = vmatpush.msra.mxu1 %v128_v25  ;;  %288 = vmatpush.msra.mxu3 %v161_v31  ;;  %v157_v47 = vld [vmem:[#allocation5 + $0x1a8] sm:$0xff]  ;;  %v106_v48 = vld [vmem:[#allocation5 + $0x10] sm:$0xff]  ;;  %v140_v50 = vld [vmem:[#allocation5 + $0x120] sm:$0xff] }
  0x25   :  { %221 = vmatpush.msra.mxu0 %v111_v28  ;;  %266 = vmatpush.msra.mxu2 %v144_v34  ;;  %v122_v49 = vld [vmem:[#allocation5 + $0x90] sm:$0xff]  ;;  %v156_v51 = vld [vmem:[#allocation5 + $0x1a0] sm:$0xff]  ;;  %v105_v52 = vld [vmem:[#allocation5 + $0x8] sm:$0xff] }
  0x26   :  { %244 = vmatpush.msra.mxu1 %v127_v29  ;;  %289 = vmatpush.msra.mxu3 %v160_v35  ;;  %v121_v53 = vld [vmem:[#allocation5 + $0x88] sm:$0xff]  ;;  %v139_v54 = vld [vmem:[#allocation5 + $0x118] sm:$0xff]  ;;  %v104_v56 = vld [vmem:[#allocation5] sm:$0xff] }
  0x27   :  { %222 = vmatpush.msra.mxu0 %v110_v32  ;;  %267 = vmatpush.msra.mxu2 %v143_v38  ;;  %v155_v55 = vld [vmem:[#allocation5 + $0x198] sm:$0xff]  ;;  %v120_v57 = vld [vmem:[#allocation5 + $0x80] sm:$0xff]  ;;  %v138_v60 = vld [vmem:[#allocation5 + $0x110] sm:$0xff] }
  0x28   :  { %245 = vmatpush.msra.mxu1 %v126_v33  ;;  %290 = vmatpush.msra.mxu3 %v159_v39  ;;  %v183_v58 = vld [vmem:[#allocation5 + $0x278] sm:$0xff]  ;;  %v154_v61 = vld [vmem:[#allocation5 + $0x190] sm:$0xff]  ;;  %v137_v0 = vld [vmem:[#allocation5 + $0x108] sm:$0xff] }
  0x29   :  { %223 = vmatpush.msra.mxu0 %v109_v36  ;;  %268 = vmatpush.msra.mxu2 %v142_v42  ;;  %v199_v59 = vld [vmem:[#allocation5 + $0x2f8] sm:$0xff]  ;;  %v182_v62 = vld [vmem:[#allocation5 + $0x270] sm:$0xff]  ;;  %v153_v1 = vld [vmem:[#allocation5 + $0x188] sm:$0xff] }
  0x2a   :  { %246 = vmatpush.msra.mxu1 %v125_v37  ;;  %291 = vmatpush.msra.mxu3 %v158_v43  ;;  %v198_v63 = vld [vmem:[#allocation5 + $0x2f0] sm:$0xff]  ;;  %v181_v2 = vld [vmem:[#allocation5 + $0x268] sm:$0xff]  ;;  %v136_v4 = vld [vmem:[#allocation5 + $0x100] sm:$0xff] }
  0x2b   :  { %224 = vmatpush.msra.mxu0 %v108_v40  ;;  %269 = vmatpush.msra.mxu2 %v141_v46  ;;  %v197_v3 = vld [vmem:[#allocation5 + $0x2e8] sm:$0xff]  ;;  %v152_v5 = vld [vmem:[#allocation5 + $0x180] sm:$0xff]  ;;  %v179_v7 = vld [vmem:[#allocation5 + $0x258] sm:$0xff] }
  0x2c   :  { %247 = vmatpush.msra.mxu1 %v124_v41  ;;  %292 = vmatpush.msra.mxu3 %v157_v47  ;;  %v180_v6 = vld [vmem:[#allocation5 + $0x260] sm:$0xff]  ;;  %v195_v9 = vld [vmem:[#allocation5 + $0x2d8] sm:$0xff]  ;;  %v90_v11 = vld [vmem:[#allocation2] sm:$0xff] }
  0x2d   :  { %225 = vmatpush.msra.mxu0 %v107_v44  ;;  %270 = vmatpush.msra.mxu2 %v140_v50  ;;  %v196_v8 = vld [vmem:[#allocation5 + $0x2e0] sm:$0xff]  ;;  %v201_v12 = vld [vmem:[#allocation5 + $0x308] sm:$0xff]  ;;  %v178_v14 = vld [vmem:[#allocation5 + $0x250] sm:$0xff] }
  0x2e   :  { %248 = vmatpush.msra.mxu1 %v123_v45  ;;  %293 = vmatpush.msra.mxu3 %v156_v51  ;;  %v92_v10 = vld [vmem:[#allocation2 + $0x10] sm:$0xff]  ;;  %v93_v13 = vld [vmem:[#allocation2 + $0x18] sm:$0xff]  ;;  %v194_v15 = vld [vmem:[#allocation5 + $0x2d0] sm:$0xff] }
  0x2f   :  { %226 = vmatpush.msra.mxu0 %v106_v48  ;;  %271 = vmatpush.msra.mxu2 %v139_v54  ;;  %v91_v16 = vld [vmem:[#allocation2 + $0x8] sm:$0xff]  ;;  %v200_v17 = vld [vmem:[#allocation5 + $0x300] sm:$0xff]  ;;  %v177_v18 = vld [vmem:[#allocation5 + $0x248] sm:$0xff] }
  0x30   :  { %249 = vmatpush.msra.mxu1 %v122_v49  ;;  %294 = vmatpush.msra.mxu3 %v155_v55  ;;  %v193_v19 = vld [vmem:[#allocation5 + $0x2c8] sm:$0xff]  ;;  %v176_v21 = vld [vmem:[#allocation5 + $0x240] sm:$0xff]  ;;  %v99_v23 = vld [vmem:[#allocation2 + $0x48] sm:$0xff] }
  0x31   :  { %227 = vmatpush.msra.mxu0 %v105_v52  ;;  %272 = vmatpush.msra.mxu2 %v138_v60  ;;  %v391_v20 = vld [vmem:[#allocation7 + $0x78] sm:$0xff]  ;;  %v192_v22 = vld [vmem:[#allocation5 + $0x2c0] sm:$0xff]  ;;  %v175_v25 = vld [vmem:[#allocation5 + $0x238] sm:$0xff] }
  0x32   :  { %250 = vmatpush.msra.mxu1 %v121_v53  ;;  %295 = vmatpush.msra.mxu3 %v154_v61  ;;  %v97_v24 = vld [vmem:[#allocation2 + $0x38] sm:$0xff]  ;;  %v191_v26 = vld [vmem:[#allocation5 + $0x2b8] sm:$0xff]  ;;  %v100_v27 = vld [vmem:[#allocation2 + $0x50] sm:$0xff] }
  0x33   :  { %228 = vmatpush.msra.mxu0 %v104_v56  ;;  %273 = vmatpush.msra.mxu2 %v137_v0  ;;  %v174_v28 = vld [vmem:[#allocation5 + $0x230] sm:$0xff]  ;;  %v390_v31 = vld [vmem:[#allocation7 + $0x70] sm:$0xff]  ;;  %v173_v32 = vld [vmem:[#allocation5 + $0x228] sm:$0xff] }
  0x34   :  { %251 = vmatpush.msra.mxu1 %v120_v57  ;;  %296 = vmatpush.msra.mxu3 %v153_v1  ;;  %v190_v29 = vld [vmem:[#allocation5 + $0x2b0] sm:$0xff]  ;;  %v189_v33 = vld [vmem:[#allocation5 + $0x2a8] sm:$0xff]  ;;  %v389_v34 = vld [vmem:[#allocation7 + $0x68] sm:$0xff] }
  0x35   :  { %305 = vmatpush.msrb.mxu0 %v183_v58  ;;  %274 = vmatpush.msra.mxu2 %v136_v4  ;;  %v98_v30 = vld [vmem:[#allocation2 + $0x40] sm:$0xff]  ;;  %v172_v35 = vld [vmem:[#allocation5 + $0x220] sm:$0xff]  ;;  %v171_v38 = vld [vmem:[#allocation5 + $0x218] sm:$0xff] }
  0x36   :  { %328 = vmatpush.msrb.mxu1 %v199_v59  ;;  %297 = vmatpush.msra.mxu3 %v152_v5  ;;  %v188_v36 = vld [vmem:[#allocation5 + $0x2a0] sm:$0xff]  ;;  %v187_v39 = vld [vmem:[#allocation5 + $0x298] sm:$0xff]  ;;  %v170_v40 = vld [vmem:[#allocation5 + $0x210] sm:$0xff] }
  0x37   :  { %306 = vmatpush.msrb.mxu0 %v182_v62  ;;  %275 = vmatmul.f32.vlgmr.msra.gmra.mxu2 %v92_v10  ;;  %v96_v37 = vld [vmem:[#allocation2 + $0x30] sm:$0xff]  ;;  %v186_v41 = vld [vmem:[#allocation5 + $0x290] sm:$0xff]  ;;  %v169_v42 = vld [vmem:[#allocation5 + $0x208] sm:$0xff] }
  0x38   :  { %329 = vmatpush.msrb.mxu1 %v198_v63  ;;  %229 = vmatmul.f32.vlgmr.msra.gmra.mxu0 %v90_v11  ;;  %v185_v43 = vld [vmem:[#allocation5 + $0x288] sm:$0xff]  ;;  %v168_v44 = vld [vmem:[#allocation5 + $0x200] sm:$0xff]  ;;  %v94_v46 = vld [vmem:[#allocation2 + $0x20] sm:$0xff] }
  0x39   :  { %307 = vmatpush.msrb.mxu0 %v181_v2  ;;  %365 = vmatpush.msrb.mxu2 %v201_v12  ;;  %v184_v45 = vld [vmem:[#allocation5 + $0x280] sm:$0xff]  ;;  %v95_v47 = vld [vmem:[#allocation2 + $0x28] sm:$0xff]  ;;  %v101_v49 = vld [vmem:[#allocation2 + $0x58] sm:$0xff] }
  0x3a   :  { %330 = vmatpush.msrb.mxu1 %v197_v3  ;;  %298 = vmatmul.f32.vlgmr.msra.gmra.mxu3 %v93_v13  ;;  %v103_v48 = vld [vmem:[#allocation2 + $0x68] sm:$0xff]  ;;  %v102_v50 = vld [vmem:[#allocation2 + $0x60] sm:$0xff]  ;;  %v387_v52 = vld [vmem:[#allocation7 + $0x58] sm:$0xff] }
  0x3b   :  { %308 = vmatpush.msrb.mxu0 %v180_v6  ;;  %252 = vmatmul.f32.vlgmr.msra.gmra.mxu1 %v91_v16  ;;  %v388_v51 = vld [vmem:[#allocation7 + $0x60] sm:$0xff]  ;;  %v386_v53 = vld [vmem:[#allocation7 + $0x50] sm:$0xff]  ;;  %v385_v54 = vld [vmem:[#allocation7 + $0x48] sm:$0xff] }
  0x3c   :  { %331 = vmatpush.msrb.mxu1 %v196_v8  ;;  %366 = vmatpush.msrb.mxu2 %v200_v17  ;;  %v384_v55 = vld [vmem:[#allocation7 + $0x40] sm:$0xff]  ;;  %v383_v56 = vld [vmem:[#allocation7 + $0x38] sm:$0xff]  ;;  %v382_v57 = vld [vmem:[#allocation7 + $0x30] sm:$0xff] }
  0x3d   :  { %309 = vmatpush.msrb.mxu0 %v179_v7  ;;  %396 = vmatpush.msrb.mxu3 %v391_v20  ;;  %v381_v58 = vld [vmem:[#allocation7 + $0x28] sm:$0xff]  ;;  %v380_v59 = vld [vmem:[#allocation7 + $0x20] sm:$0xff]  ;;  %v379_v60 = vld [vmem:[#allocation7 + $0x18] sm:$0xff] }
  0x3e   :  { %332 = vmatpush.msrb.mxu1 %v195_v9  ;;  %v378_v61 = vld [vmem:[#allocation7 + $0x10] sm:$0xff]  ;;  %v377_v62 = vld [vmem:[#allocation7 + $0x8] sm:$0xff]  ;;  %v376_v63 = vld [vmem:[#allocation7] sm:$0xff] }
  0x3f   :  { %310 = vmatpush.msrb.mxu0 %v178_v14  ;;  %278 = vmatmul.f32.gmra.mxu2 %v99_v23  ;;  %v498_v3 = vld [vmem:[%s718_s2] ss:$0 sm:$0xff]  ;;  %v436_v4 = vld [vmem:[#allocation8 + $0x78] sm:$0xff]  ;;  %v435_v5 = vld [vmem:[#allocation8 + $0x70] sm:$0xff] }
  0x40   :  { %333 = vmatpush.msrb.mxu1 %v194_v15  ;;  %232 = vmatmul.f32.gmra.mxu0 %v97_v24  ;;  %v434_v7 = vld [vmem:[#allocation8 + $0x68] sm:$0xff]  ;;  %v433_v9 = vld [vmem:[#allocation8 + $0x60] sm:$0xff]  ;;  %v432_v13 = vld [vmem:[#allocation8 + $0x58] sm:$0xff] }
  0x41   :  { %311 = vmatpush.msrb.mxu0 %v177_v18  ;;  %397 = vmatpush.msrb.mxu3 %v390_v31  ;;  %v431_v14 = vld [vmem:[#allocation8 + $0x50] sm:$0xff]  ;;  %v430_v18 = vld [vmem:[#allocation8 + $0x48] sm:$0xff]  ;;  %v428_v23 = vld [vmem:[#allocation8 + $0x38] sm:$0xff] }
  0x42   :  { %334 = vmatpush.msrb.mxu1 %v193_v19  ;;  %301 = vmatmul.f32.gmra.mxu3 %v100_v27  ;;  %v429_v19 = vld [vmem:[#allocation8 + $0x40] sm:$0xff]  ;;  %v427_v27 = vld [vmem:[#allocation8 + $0x30] sm:$0xff] }
  0x43   :  { %312 = vmatpush.msrb.mxu0 %v176_v21  ;;  %255 = vmatmul.f32.gmra.mxu1 %v98_v30  ;;  %v426_v30 = vld [vmem:[#allocation8 + $0x28] sm:$0xff] }
  0x44   :  { %335 = vmatpush.msrb.mxu1 %v192_v22  ;;  %398 = vmatpush.msrb.mxu3 %v389_v34 }
  0x45   :  { %313 = vmatpush.msrb.mxu0 %v175_v25  ;;  %441 = vmatpush.msra.mxu2 %v436_v4 }
  0x46   :  { %336 = vmatpush.msrb.mxu1 %v191_v26  ;;  %399 = vmatpush.msrb.mxu3 %v388_v51 }
  0x47   :  { %314 = vmatpush.msrb.mxu0 %v174_v28  ;;  %487 = vmatmul.msk.f32.vlgmr.msrb.gmra.mxu2 %vm206_vm0, %v96_v37 }
  0x48   :  { %337 = vmatpush.msrb.mxu1 %v190_v29  ;;  %400 = vmatpush.msrb.mxu3 %v387_v52 }
  0x49   :  { %315 = vmatpush.msrb.mxu0 %v173_v32  ;;  %442 = vmatpush.msra.mxu2 %v435_v5 }
  0x4a   :  { %338 = vmatpush.msrb.mxu1 %v189_v33  ;;  %401 = vmatpush.msrb.mxu3 %v386_v53  ;;  %v425_v33 = vld [vmem:[#allocation8 + $0x20] sm:$0xff] }
  0x4b   :  { %316 = vmatpush.msrb.mxu0 %v172_v35  ;;  %443 = vmatpush.msra.mxu2 %v434_v7 }
  0x4c   :  { %339 = vmatpush.msrb.mxu1 %v188_v36  ;;  %402 = vmatpush.msrb.mxu3 %v385_v54  ;;  %v424_v36 = vld [vmem:[#allocation8 + $0x18] sm:$0xff]  ;;  %v500_v54 = vld [vmem:[%s722_s6] ss:$0 sm:$0xff] }
  0x4d   :  { %317 = vmatpush.msrb.mxu0 %v171_v38  ;;  %444 = vmatpush.msra.mxu2 %v433_v9 }
  0x4e   :  { %340 = vmatpush.msrb.mxu1 %v187_v39  ;;  %403 = vmatpush.msrb.mxu3 %v384_v55 }
  0x4f   :  { %318 = vmatpush.msrb.mxu0 %v170_v40  ;;  %488 = vmatmul.msk.f32.gmra.mxu2 %vm206_vm0, %v103_v48 }
  0x50   :  { %341 = vmatpush.msrb.mxu1 %v186_v41  ;;  %404 = vmatpush.msrb.mxu3 %v383_v56 }
  0x51   :  { %319 = vmatpush.msrb.mxu0 %v169_v42  ;;  %445 = vmatpush.msra.mxu2 %v432_v13 }
  0x52   :  { %342 = vmatpush.msrb.mxu1 %v185_v43  ;;  %405 = vmatpush.msrb.mxu3 %v382_v57 }
  0x53   :  { %320 = vmatpush.msrb.mxu0 %v168_v44  ;;  %446 = vmatpush.msra.mxu2 %v431_v14  ;;  %v423_v44 = vld [vmem:[#allocation8 + $0x10] sm:$0xff] }
  0x54   :  { %343 = vmatpush.msrb.mxu1 %v184_v45  ;;  %321 = vmatmul.f32.vlgmr.msrb.gmra.mxu0 %v94_v46  ;;  %v422_v45 = vld [vmem:[#allocation8 + $0x8] sm:$0xff]  ;;  %v421_v46 = vld [vmem:[#allocation8] sm:$0xff] }
  0x55   :  { %344 = vmatmul.f32.vlgmr.msrb.gmra.mxu1 %v95_v47  ;;  %406 = vmatpush.msrb.mxu3 %v381_v58  ;;  %v499_v47 = vld [vmem:[%s720_s4] ss:$0 sm:$0xff]  ;;  %s472_s4 = sshll.u32 %s723_s7, 4  ;;  %s473_s4 = int_to_ptr.hbm [resolvable:$true] %s472_s4 }
  0x56   :  { %447 = vmatpush.msra.mxu2 %v430_v18 }
  0x57   :  { %407 = vmatpush.msrb.mxu3 %v380_v59 }
  0x58   :  { %448 = vmatpush.msra.mxu2 %v429_v19 }
  0x59   :  { %408 = vmatpush.msrb.mxu3 %v379_v60 }
  0x5a   :  { %449 = vmatpush.msra.mxu2 %v428_v23 }
  0x5b   :  { %409 = vmatpush.msrb.mxu3 %v378_v61 }
  0x5c   :  { %324 = vmatmul.f32.gmra.mxu0 %v101_v49  ;;  %450 = vmatpush.msra.mxu2 %v427_v27 }
  0x5d   :  { %347 = vmatmul.f32.gmra.mxu1 %v102_v50  ;;  %410 = vmatpush.msrb.mxu3 %v377_v62 }
  0x5e   :  { %451 = vmatpush.msra.mxu2 %v426_v30 }
  0x5f   :  { %411 = vmatpush.msrb.mxu3 %v376_v63 }
  0x60   :  { %452 = vmatpush.msra.mxu2 %v425_v33 }
  0x62   :  { %453 = vmatpush.msra.mxu2 %v424_v36 }
  0x64   :  { %454 = vmatpush.msra.mxu2 %v423_v44 }
  0x66   :  { %455 = vmatpush.msra.mxu2 %v422_v45 }
  0x68   :  { %456 = vmatpush.msra.mxu2 %v421_v46 }
  0xb5   :  { %v230_v0 = vpop.f32.mrf.mxu0 }
  0xb6   :  { %v231_v6 = vadd.f32 %v498_v3, %v230_v0 }
  0xb8   :  { %v253_v1 = vpop.f32.mrf.mxu1 }
  0xb9   :  { %v254_v12 = vadd.f32 %v253_v1, %v231_v6 }
  0xba   :  { %v276_v2 = vpop.f32.mrf.mxu2 }
  0xbb   :  { %v277_v16 = vadd.f32 %v276_v2, %v254_v12 }
  0xbd   :  { %v233_v8 = vpop.f32.mrf.mxu0  ;;  %v299_v15 = vpop.f32.mrf.mxu3 }
  0xbe   :  { %v234_v17 = vadd.f32 %v498_v3, %v233_v8  ;;  %v300_v20 = vadd.f32 %v299_v15, %v277_v16 }
  0xc0   :  { %v256_v10 = vpop.f32.mrf.mxu1 }
  0xc1   :  { %v257_v21 = vadd.f32 %v256_v10, %v234_v17 }
  0xc2   :  { %v279_v11 = vpop.f32.mrf.mxu2 }
  0xc3   :  { %v280_v28 = vadd.f32 %v279_v11, %v257_v21 }
  0xc5   :  { %v302_v31 = vpop.f32.mrf.mxu3 }
  0xc6   :  { %v303_v34 = vadd.f32 %v302_v31, %v280_v28 }
  0xca   :  { %v368_v22 = vpop.f32.mrf.mxu2 }
  0xd1   :  { %v322_v24 = vpop.f32.mrf.mxu0 }
  0xd2   :  { %v345_v25 = vpop.f32.mrf.mxu1  ;;  %v323_v26 = vadd.f32 %v322_v24, %v300_v20  ;;  %v371_v40 = vpop.f32.mrf.mxu2 }
  0xd4   :  { %v346_v29 = vadd.f32 %v345_v25, %v323_v26 }
  0xd6   :  { %v369_v32 = vadd.f32 %v368_v22, %v346_v29 }
  0xd8   :  { %v374_v35 = vmax.f32 %v369_v32, 0.0 }
  0xd9   :  { %v325_v37 = vpop.f32.mrf.mxu0 }
  0xda   :  { %v348_v38 = vpop.f32.mrf.mxu1  ;;  %v326_v39 = vadd.f32 %v325_v37, %v303_v34  ;;  %412 = vmatmul.f32.vlgmr.msrb.gmra.mxu3 %v374_v35 }
  0xdc   :  { %v349_v41 = vadd.f32 %v348_v38, %v326_v39 }
  0xde   :  { %v372_v42 = vadd.f32 %v371_v40, %v349_v41 }
  0xe0   :  { %v375_v43 = vmax.f32 %v372_v42, 0.0 }
  0xe2   :  { %415 = vmatmul.f32.gmra.mxu3 %v375_v43 }
 0x15d   :  { %v413_v48 = vpop.f32.mrf.mxu3 }
 0x15e   :  { %v414_v49 = vadd.f32 %v499_v47, %v413_v48 }
 0x160   :  { %v419_v50 = vmax.f32 %v414_v49, 0.0 }
 0x162   :  { %457 = vmatmul.f32.vlgmr.msra.gmra.mxu2 %v419_v50 }
 0x165   :  { %v416_v51 = vpop.f32.mrf.mxu3 }
 0x166   :  { %v417_v52 = vadd.f32 %v499_v47, %v416_v51 }
 0x168   :  { %v420_v53 = vmax.f32 %v417_v52, 0.0 }
 0x16a   :  { %460 = vmatmul.f32.gmra.mxu2 %v420_v53 }
 0x1e5   :  { %v458_v55 = vpop.f32.mrf.mxu2 }
 0x1e6   :  { %v459_v56 = vadd.f32 %v500_v54, %v458_v55 }
 0x1e8   :  { %464 = vst [vmem:[#allocation10] sm:$0xff] %v459_v56 }
 0x1ed   :  { %v461_v57 = vpop.f32.mrf.mxu2 }
 0x1ee   :  { %v462_v58 = vadd.f32 %v500_v54, %v461_v57 }
 0x1f0   :  { %465 = vst [vmem:[#allocation10 + $0x8] sm:$0xff] %v462_v58 }
 0x1f1   :  { %478 = dma.vmem_to_hbm [thread:$0]  %s471_s27, 256, %s473_s4, [#allocation4], %s630_s9, %s630_s9, %s631_s10  }
 0x1f2   :  { %627 = dma.done.wait [#allocation4], 256  }
 0x1f3   :  { %628 = vsyncadd [#allocation4], 4294967040 }
 0x1f4   :  { %483 = vsyncpa [#allocation3], 1 }
 0x1f5   :  { %484 = vsyncpa [#allocation6], 1 }
 0x1f6   :  { %485 = vsyncpa [#allocation9], 1 }
 0x1f7   :  { %486 = vsyncpa [#allocation4], 1 }

</bundles_post_ra>
